<compile_context>
chip_gen: v7x
topology: tpu7x:2x2x1
jax: 0.10.0
libtpu: 0.0.40
codegen_flags: <defaults>
</compile_context>

<pallas_src>
import functools

import jax
import jax.numpy as jnp
from jax.experimental import pallas as pl
from jax.experimental.pallas import tpu as pltpu

LANE = 128       # vreg lane width
SUB_BF16 = 16    # sublane packing for bf16 (one packed tile = (16, 128))


def _round_up(x, m):
    return (x + m - 1) // m * m


def _cdiv(a, b):
    return -(-a // b)


# ----------------------------------------------------------------------------
# Pallas kernel: fused 3-layer MLP -> mean.
#   x_ref   : [tm, Sp]              bf16 batch tile of states (Sp = round_up(S,16))
#   w_ref   : [Sp + 2*Hp + 16, Hp]  bf16 packed slab: W1 | W2 | W3 | bias rows
#   mean_ref: [tm, A]               f32 mean output at the true action width
# ----------------------------------------------------------------------------
def policy_kernel(x_ref, w_ref, mean_ref, *, Sp, Hp, A):
    x = x_ref[...]                                      # [tm, Sp] bf16

    w1 = w_ref[:Sp, :]                                  # [Sp, Hp]  (16-aligned slices)
    w2 = w_ref[Sp:Sp + Hp, :]                           # [Hp, Hp]
    w3 = w_ref[Sp + Hp:Sp + 2 * Hp, :]                  # [Hp, Hp]  (cols >= A are 0)
    b = w_ref[Sp + 2 * Hp:, :].astype(jnp.float32)      # [16, Hp]  bias rows 0..2

    b1 = b[0:1, :]
    b2 = b[1:2, :]
    b3 = b[2:3, :A]

    # bf16 x bf16 -> f32 accumulation on the MXU; bias / ReLU stay f32.
    h1 = jnp.dot(x, w1, preferred_element_type=jnp.float32)
    h1 = jnp.maximum(h1 + b1, 0.0)                      # padded hidden lanes stay 0

    h2 = jnp.dot(h1.astype(jnp.bfloat16), w2, preferred_element_type=jnp.float32)
    h2 = jnp.maximum(h2 + b2, 0.0)

    mean = jnp.dot(h2.astype(jnp.bfloat16), w3, preferred_element_type=jnp.float32)
    mean_ref[...] = mean[:, :A] + b3                    # store only the real A lanes


# ----------------------------------------------------------------------------
# Wrapper
# ----------------------------------------------------------------------------
def policy_forward(state, packed, *, tm_max=2048):
    """Returns (mean [B, A] f32, std [A] f32) of the Normal action distribution."""
    w_slab, log_std, (S, A, Sp, Hp) = packed
    B = state.shape[0]

    # Batch tiling: minimal 16-row padding, adaptive tile size so Bp = tm * n
    # exactly (no up-to-tm-1 wasted rows); >= 2 programs for large batches so
    # both TensorCores on v7x get work via the "parallel" grid axis.
    Bmin = _round_up(B, SUB_BF16)
    n_prog = max(1, _cdiv(Bmin, tm_max))
    if Bmin >= 1024:
        n_prog = max(n_prog, 2)
    tm = _round_up(_cdiv(Bmin, n_prog), SUB_BF16)
    Bp = tm * n_prog

    # Minimal zero-pad: rows -> Bp, lanes only S -> Sp (= S for S multiple of 16).
    x = jnp.pad(state.astype(jnp.bfloat16), ((0, Bp - B), (0, Sp - S)))

    kernel = functools.partial(policy_kernel, Sp=Sp, Hp=Hp, A=A)
    mean_p = pl.pallas_call(
        kernel,
        out_shape=jax.ShapeDtypeStruct((Bp, A), jnp.float32),
        grid_spec=pltpu.PrefetchScalarGridSpec(
            num_scalar_prefetch=0,
            grid=(n_prog,),
            in_specs=[
                pl.BlockSpec((tm, Sp), lambda i: (i, 0)),        # streamed batch tile
                pl.BlockSpec(w_slab.shape, lambda i: (0, 0)),    # resident weight slab
            ],
            out_specs=pl.BlockSpec((tm, A), lambda i: (i, 0)),
        ),
        compiler_params=pltpu.CompilerParams(
            dimension_semantics=("parallel",),   # shard batch across TCs (v7x)
        ),
    )(x, w_slab)

    mean = mean_p[:B] if Bp != B else mean_p
    # std = exp(log_std) is input independent; shape (A,) broadcasts in Normal.
    std = jnp.exp(log_std)
    return mean, std


# ----------------------------------------------------------------------------
# Deterministic parameter construction (mirrors the PyTorch __init__):
#   nn.Linear(state_dim, 64) / Linear(64, 64) / Linear(64, action_dim)
#   weights: orthogonal init; biases: 0; log_std: zeros(action_dim)
# ----------------------------------------------------------------------------
def orthogonal_init(key, out_features, in_features):
    """Orthogonal matrix (out_features, in_features), like nn.init.orthogonal_."""
    rows, cols = out_features, in_features
    big, small = max(rows, cols), min(rows, cols)
    a = jax.random.normal(key, (big, small), dtype=jnp.float32)
    q, r = jnp.linalg.qr(a)
    d = jnp.sign(jnp.diag(r))
    q = q * d[None, :]
    if rows < cols:
        q = q.T
    return q.astype(jnp.float32)


def make_params(key, state_dim, action_dim, hidden=64):
    """Unpadded parameters, weights stored [in, out] (transposed vs PyTorch)."""
    k1, k2, k3 = jax.random.split(key, 3)
    w1 = orthogonal_init(k1, hidden, state_dim).T        # [S, 64]
    w2 = orthogonal_init(k2, hidden, hidden).T           # [64, 64]
    w3 = orthogonal_init(k3, action_dim, hidden).T       # [64, A]
    b1 = jnp.zeros((hidden,), jnp.float32)
    b2 = jnp.zeros((hidden,), jnp.float32)
    b3 = jnp.zeros((action_dim,), jnp.float32)
    log_std = jnp.zeros((action_dim,), jnp.float32)      # nn.Parameter(zeros(A))
    return (w1, b1, w2, b2, w3, b3, log_std)


def pack_params(params, state_dim, action_dim, hidden=64):
    """Pack weights + biases into one zero-padded bf16 slab [Sp + 2*Hp + 16, 128]."""
    w1, b1, w2, b2, w3, b3, log_std = params
    Sp = _round_up(state_dim, SUB_BF16)   # bf16 sublane alignment (NOT padded to 128)
    Hp = LANE                             # hidden / output lane width: 64 -> 128
    assert hidden <= Hp and action_dim <= Hp, "hidden/action dims must fit 128 lanes"

    W1 = jnp.zeros((Sp, Hp), jnp.float32).at[:state_dim, :hidden].set(w1)
    W2 = jnp.zeros((Hp, Hp), jnp.float32).at[:hidden, :hidden].set(w2)
    W3 = jnp.zeros((Hp, Hp), jnp.float32).at[:hidden, :action_dim].set(w3)
    # Bias block: padded entries MUST stay exactly zero so padded hidden lanes
    # remain zero through ReLU and the next matmul's K reduction.
    Bm = jnp.zeros((SUB_BF16, Hp), jnp.float32)
    Bm = Bm.at[0, :hidden].set(b1).at[1, :hidden].set(b2).at[2, :action_dim].set(b3)

    w_slab = jnp.concatenate([W1, W2, W3, Bm], axis=0).astype(jnp.bfloat16)
    dims = (state_dim, action_dim, Sp, Hp)
    return (w_slab, log_std, dims)


if __name__ == "__main__":
    key = jax.random.PRNGKey(0)
    k_params, k_state = jax.random.split(key)

    batch, state_dim, action_dim, hidden = 4, 32, 8, 64
    params = make_params(k_params, state_dim, action_dim, hidden)
    packed = pack_params(params, state_dim, action_dim, hidden)
    state = jax.random.normal(k_state, (batch, state_dim), dtype=jnp.float32)

    mean, std = policy_forward(state, packed)
    jax.block_until_ready((mean, std))

    # Reference #1: pure JAX with the SAME bf16-weight / f32-accumulate math.
    w1, b1, w2, b2, w3, b3, log_std = params
    bf = jnp.bfloat16

    def bdot(a, w):
        return jnp.dot(a.astype(bf), w.astype(bf), preferred_element_type=jnp.float32)

    h1 = jnp.maximum(bdot(state, w1) + b1[None, :], 0.0)
    h2 = jnp.maximum(bdot(h1, w2) + b2[None, :], 0.0)
    mean_ref = bdot(h2, w3) + b3[None, :]

    # Reference #2: the original full-f32 PyTorch forward (looser tolerance for
    # the bf16 quantization of weights/activations).
    h1f = jnp.maximum(state @ w1 + b1[None, :], 0.0)
    h2f = jnp.maximum(h1f @ w2 + b2[None, :], 0.0)
    mean_f32 = h2f @ w3 + b3[None, :]

    assert mean.shape == (batch, action_dim)
    assert std.shape == (action_dim,)
    assert jnp.allclose(mean, mean_ref, atol=2e-3, rtol=2e-3), "mean mismatch (bf16 ref)"
    assert jnp.allclose(mean, mean_f32, atol=5e-2, rtol=5e-2), "mean drifted from f32 ref"
    assert jnp.allclose(std, jnp.exp(log_std), atol=1e-6), "std mismatch"

    # TODO(synk): Normal(mean, std).sample() in select_action is a host-side RNG
    # draw; sampling stays outside the kernel — (mean, std) fully parameterize
    # the returned distribution.
    print("KERNEL_OK")
</pallas_src>

<mosaic_0001>
module attributes {stable_mosaic.version = 11 : i64} {
  func.func @policy_kernel(%arg0: i32, %arg1: memref<16x32xbf16, #tpu.memory_space<vmem>>, %arg2: memref<304x128xbf16, #tpu.memory_space<vmem>>, %arg3: memref<16x8xf32, #tpu.memory_space<vmem>>) attributes {dimension_semantics = [#tpu.dimension_semantics<parallel>], iteration_bounds = array<i64: 1>, scalar_prefetch = 0 : i64, scratch_operands = 0 : i64, tpu.core_type = #tpu.core_type<tc>, window_params = [{transform_indices = @transform_0, window_bounds = array<i64: 16, 32>}, {pipeline_mode = #tpu.pipeline_mode<synchronous>, transform_indices = @transform_1, window_bounds = array<i64: 304, 128>}, {transform_indices = @transform_2, window_bounds = array<i64: 16, 8>}]} {
    %c0 = arith.constant 0 : index
    %c0_0 = arith.constant 0 : index
    %0 = vector.load %arg1[%c0, %c0_0] : memref<16x32xbf16, #tpu.memory_space<vmem>>, vector<16x32xbf16>
    %c0_1 = arith.constant 0 : index
    %c0_2 = arith.constant 0 : index
    %1 = vector.load %arg2[%c0_1, %c0_2] : memref<304x128xbf16, #tpu.memory_space<vmem>>, vector<32x128xbf16>
    %c32 = arith.constant 32 : index
    %c0_3 = arith.constant 0 : index
    %2 = vector.load %arg2[%c32, %c0_3] : memref<304x128xbf16, #tpu.memory_space<vmem>>, vector<128x128xbf16>
    %c160 = arith.constant 160 : index
    %c0_4 = arith.constant 0 : index
    %3 = vector.load %arg2[%c160, %c0_4] : memref<304x128xbf16, #tpu.memory_space<vmem>>, vector<128x128xbf16>
    %c288 = arith.constant 288 : index
    %c0_5 = arith.constant 0 : index
    %4 = vector.load %arg2[%c288, %c0_5] : memref<304x128xbf16, #tpu.memory_space<vmem>>, vector<16x128xbf16>
    %5 = arith.extf %4 : vector<16x128xbf16> to vector<16x128xf32>
    %6 = vector.extract_strided_slice %5 {offsets = [0, 0], sizes = [1, 128], strides = [1, 1]} : vector<16x128xf32> to vector<1x128xf32>
    %7 = vector.extract_strided_slice %5 {offsets = [1, 0], sizes = [1, 128], strides = [1, 1]} : vector<16x128xf32> to vector<1x128xf32>
    %8 = vector.extract_strided_slice %5 {offsets = [2, 0], sizes = [1, 8], strides = [1, 1]} : vector<16x128xf32> to vector<1x8xf32>
    %cst = arith.constant dense<0.000000e+00> : vector<16x128xf32>
    %9 = tpu.matmul %0, %1, %cst {dimension_numbers = #tpu.dot_dimension_numbers<[1], [0], [0], [1], [0, 0, 1, 1], [], []>} : vector<16x32xbf16>, vector<32x128xbf16>, vector<16x128xf32> -> vector<16x128xf32>
    %10 = vector.broadcast %6 : vector<1x128xf32> to vector<16x128xf32>
    %11 = arith.addf %9, %10 : vector<16x128xf32>
    %cst_6 = arith.constant 0.000000e+00 : f32
    %12 = vector.broadcast %cst_6 : f32 to vector<16x128xf32>
    %13 = arith.maximumf %11, %12 : vector<16x128xf32>
    %14 = arith.truncf %13 : vector<16x128xf32> to vector<16x128xbf16>
    %cst_7 = arith.constant dense<0.000000e+00> : vector<16x128xf32>
    %15 = tpu.matmul %14, %2, %cst_7 {dimension_numbers = #tpu.dot_dimension_numbers<[1], [0], [0], [1], [0, 0, 1, 1], [], []>} : vector<16x128xbf16>, vector<128x128xbf16>, vector<16x128xf32> -> vector<16x128xf32>
    %16 = vector.broadcast %7 : vector<1x128xf32> to vector<16x128xf32>
    %17 = arith.addf %15, %16 : vector<16x128xf32>
    %cst_8 = arith.constant 0.000000e+00 : f32
    %18 = vector.broadcast %cst_8 : f32 to vector<16x128xf32>
    %19 = arith.maximumf %17, %18 : vector<16x128xf32>
    %20 = arith.truncf %19 : vector<16x128xf32> to vector<16x128xbf16>
    %cst_9 = arith.constant dense<0.000000e+00> : vector<16x128xf32>
    %21 = tpu.matmul %20, %3, %cst_9 {dimension_numbers = #tpu.dot_dimension_numbers<[1], [0], [0], [1], [0, 0, 1, 1], [], []>} : vector<16x128xbf16>, vector<128x128xbf16>, vector<16x128xf32> -> vector<16x128xf32>
    %22 = vector.extract_strided_slice %21 {offsets = [0, 0], sizes = [16, 8], strides = [1, 1]} : vector<16x128xf32> to vector<16x8xf32>
    %23 = vector.broadcast %8 : vector<1x8xf32> to vector<16x8xf32>
    %24 = arith.addf %22, %23 : vector<16x8xf32>
    %c0_10 = arith.constant 0 : index
    %c0_11 = arith.constant 0 : index
    %25 = vector.load %arg3[%c0_10, %c0_11] : memref<16x8xf32, #tpu.memory_space<vmem>>, vector<16x8xf32>
    tpu.vector_store %arg3[%c0_10, %c0_11], %24 {strides = array<i32>} : memref<16x8xf32, #tpu.memory_space<vmem>>, vector<16x8xf32>,
    return
  }
  func.func @transform_0(%arg0: i32) -> (i32, i32) {
    %c0_i32 = arith.constant 0 : i32
    %c0_i32_0 = arith.constant 0 : i32
    return %arg0, %c0_i32 : i32, i32
  }
  func.func @transform_1(%arg0: i32) -> (i32, i32) {
    %c0_i32 = arith.constant 0 : i32
    %c0_i32_0 = arith.constant 0 : i32
    %c0_i32_1 = arith.constant 0 : i32
    return %c0_i32, %c0_i32_0 : i32, i32
  }
  func.func @transform_2(%arg0: i32) -> (i32, i32) {
    %c0_i32 = arith.constant 0 : i32
    %c0_i32_0 = arith.constant 0 : i32
    return %arg0, %c0_i32 : i32, i32
  }
}

</mosaic_0001>

<bundles_post_ra>
// kernel: tpu_custom_call.1
= control target key start
LH: loop header
LB: loop body
LE: loop exit
PB: predicated region body
PF: predicated region fallthrough
CT: control target
= control target key end

     0   :  { %7 = vsyncpa [#allocation3], 0  ;;  %s586_s0 = inlined_call_operand.hbm [shape: bf16[16,32], index: 0, kind: input, shape index: {}]   ;;  %s587_s1 = inlined_call_operand.hbm [shape: bf16[304,128], index: 1, kind: input, shape index: {}]   ;;  %s588_s2 = inlined_call_operand.vmem [shape: f32[16,8], index: 2, kind: output, shape index: {}]  }
   0x1   :  { %8 = vsyncpa [#allocation5], 0  ;;  %s511_s9 = smov [#allocation2]   ;;  %s463_s13 = scalar_lea.hbm %s586_s0, 128 }
   0x2   :  { %s14_s10 = sshll.u32 %s511_s9, 4  ;;  %p464_p0 = scmp.ne.s32.totalorder %s586_s0, %s463_s13  ;;  %s15_s10 = int_to_ptr.vmem [resolvable:$true] %s14_s10 }
   0x3   :  { %p467_p1 = scmp.lt.u32.totalorder %s463_s13, %s586_s0 }
   0x5   :  { %p469_p2 = pnand %p467_p1, %p464_p0 }
   0x7   :  { %472 = shalt.err (!%p469_p2)
}
   0x8   :  { %s473_s18 = scalar_lea.vmem %s15_s10, 128  ;;  %p478_p4 = scmp.lt.s32.totalorder %s15_s10, %s15_s10 }
   0x9   :  { %p474_p3 = scmp.ne.s32.totalorder %s15_s10, %s473_s18  ;;  %p479_p5 = scmp.lt.s32.totalorder %s473_s18, %s473_s18 }
   0xb   :  { %p480_p6 = por %p479_p5, %p478_p4 }
   0xd   :  { %p481_p7 = pnand %p480_p6, %p474_p3 }
   0xf   :  { %484 = shalt.err (!%p481_p7)
}
  0x10   :  { %s512_s19 = smov 64   ;;  %s513_s20 = smov 4  }
  0x11   :  { %20 = dma.hbm_to_vmem [thread:$0]  %s586_s0, 128, %s15_s10, [#allocation3], %s512_s19, %s512_s19, %s513_s20  }
  0x12   :  { %s514_s23 = smov [#allocation4]   ;;  %s485_s27 = scalar_lea.hbm %s587_s1, 2432 }
  0x13   :  { %s26_s24 = sshll.u32 %s514_s23, 4  ;;  %p486_p8 = scmp.ne.s32.totalorder %s587_s1, %s485_s27  ;;  %s27_s24 = int_to_ptr.vmem [resolvable:$true] %s26_s24 }
  0x14   :  { %p489_p9 = scmp.lt.u32.totalorder %s485_s27, %s587_s1 }
  0x16   :  { %p491_p10 = pnand %p489_p9, %p486_p8 }
  0x18   :  { %494 = shalt.err (!%p491_p10)
}
  0x19   :  { %s495_s4 = scalar_lea.vmem %s27_s24, 2432  ;;  %p500_p12 = scmp.lt.s32.totalorder %s27_s24, %s27_s24 }
  0x1a   :  { %p496_p11 = scmp.ne.s32.totalorder %s27_s24, %s495_s4  ;;  %p501_p13 = scmp.lt.s32.totalorder %s495_s4, %s495_s4 }
  0x1c   :  { %p502_p0 = por %p501_p13, %p500_p12 }
  0x1e   :  { %p503_p1 = pnand %p502_p0, %p496_p11 }
  0x20   :  { %506 = shalt.err (!%p503_p1)
}
  0x21   :  { %32 = dma.hbm_to_vmem [thread:$0]  %s587_s1, 2432, %s27_s24, [#allocation5], %s512_s19, %s512_s19, %s513_s20  }
  0x22   :  { %507 = dma.done.wait [#allocation3], 128  }
  0x23   :  { %508 = vsyncadd [#allocation3], 4294967168 }
  0x24   :  { %509 = dma.done.wait [#allocation5], 2432  }
  0x25   :  { %510 = vsyncadd [#allocation5], 4294964864  ;;  %v515_v0 = vmov 0.0   ;;  %vm516_vm0 = vmmov 0   ;;  %v444_v1 = vld [vmem:[#allocation4] sm:$0xff]   ;;  %v445_v2 = vld [vmem:[#allocation4 + $0x8] sm:$0xff]   ;;  %v80_v18 = vlaneseq }
  0x26   :  { %390 = vmatprep.subr.bf16.mxu0 %v515_v0  ;;  %394 = vmatprep.mubr.msk.bf16.mxu0 %vm516_vm0, %v515_v0  ;;  %v447_v3 = vld [vmem:[#allocation4 + $0x10] sm:$0xff]   ;;  %v446_v4 = vld [vmem:[#allocation2] sm:$0xff]   ;;  %vm101_vm1 = vcmask 261120   ;;  %v449_v6 = vld [vmem:[#allocation4 + $0x20] sm:$0xff]   ;;  %vm340_vm2 = vcmask 64512  }
  0x27   :  { %398 = vmatprep.subr.bf16.mxu1 %v515_v0  ;;  %414 = vmatprep.mubr.msk.bf16.mxu1 %vm516_vm0, %v515_v0  ;;  %v448_v5 = vld [vmem:[#allocation4 + $0x18] sm:$0xff]   ;;  %v450_v7 = vld [vmem:[#allocation4 + $0x28] sm:$0xff]   ;;  %v451_v8 = vld [vmem:[#allocation4 + $0x30] sm:$0xff]   ;;  %v81_v19 = vshrl.u32 %v80_v18, 7 }
  0x28   :  { %391 = vmatpush3.bf16.msra.mxu0 %v444_v1  ;;  %399 = vmatpush3.bf16.msra.mxu1 %v447_v3  ;;  %v452_v9 = vld [vmem:[#allocation4 + $0x38] sm:$0xff]   ;;  %v453_v10 = vld [vmem:[#allocation4 + $0x40] sm:$0xff]   ;;  %v454_v11 = vld [vmem:[#allocation4 + $0x48] sm:$0xff]  }
  0x29   :  { %392 = vmatprep.subr.bf16.mxu0 %v515_v0  ;;  %400 = vmatprep.subr.bf16.mxu1 %v515_v0  ;;  %v455_v12 = vld [vmem:[#allocation4 + $0x50] sm:$0xff]   ;;  %v456_v13 = vld [vmem:[#allocation4 + $0x58] sm:$0xff]   ;;  %v457_v14 = vld [vmem:[#allocation4 + $0x60] sm:$0xff]   ;;  %v82_v22 = vsub.s32 0, %v81_v19  ;;  %v151_v35 = vsub.s32 1, %v81_v19  ;;  %v336_v46 = vsub.s32 2, %v81_v19 }
  0x2a   :  { %v458_v15 = vld [vmem:[#allocation4 + $0x68] sm:$0xff]   ;;  %v459_v16 = vld [vmem:[#allocation4 + $0x70] sm:$0xff]   ;;  %v460_v17 = vld [vmem:[#allocation4 + $0x78] sm:$0xff]  }
  0x2b   :  { %v78_v20 = vld [vmem:[#allocation4 + $0x90] sm:$0xf]  ;;  %v461_v33 = vld [vmem:[#allocation4 + $0x80] sm:$0xff]   ;;  %v462_v34 = vld [vmem:[#allocation4 + $0x88] sm:$0xff]  }
  0x2c   :  { %393 = vmatpush3.bf16.msra.mxu0 %v445_v2  ;;  %401 = vmatpush3.bf16.msra.mxu1 %v448_v5  ;;  %v79_v21 = vunpack.c.l.bf16 %v78_v20 }
  0x2d   :  { %418 = vmatprep.subr.bf16.mxu0 %v515_v0  ;;  %402 = vmatprep.subr.bf16.mxu1 %v515_v0 }
  0x2e   :  { %v83_v23 = vrot.slane %v79_v21, %v82_v22  ;;  %v152_v36 = vrot.slane %v79_v21, %v151_v35  ;;  %v337_v47 = vrot.slane %v79_v21, %v336_v46 }
  0x2f   :  { %395 = vmatmul.mubr.msk.bf16.vlgmr.msra.gmra.mrb[0].mxu0 %vm101_vm1, %v446_v4 }
  0x30   :  { %434 = vmatprep.mubr.msk.bf16.mxu0 %vm516_vm0, %v515_v0  ;;  %403 = vmatpush3.bf16.msra.mxu1 %v449_v6 }
  0x31   :  { %404 = vmatprep.subr.bf16.mxu1 %v515_v0  ;;  %419 = vmatpush3.bf16.msra.mxu0 %v455_v12 }
  0x32   :  { %420 = vmatprep.subr.bf16.mxu0 %v515_v0 }
  0x34   :  { %405 = vmatpush3.bf16.msra.mxu1 %v450_v7 }
  0x35   :  { %406 = vmatprep.subr.bf16.mxu1 %v515_v0  ;;  %421 = vmatpush3.bf16.msra.mxu0 %v456_v13 }
  0x36   :  { %422 = vmatprep.subr.bf16.mxu0 %v515_v0 }
  0x38   :  { %407 = vmatpush3.bf16.msra.mxu1 %v451_v8 }
  0x39   :  { %408 = vmatprep.subr.bf16.mxu1 %v515_v0  ;;  %423 = vmatpush3.bf16.msra.mxu0 %v457_v14 }
  0x3a   :  { %424 = vmatprep.subr.bf16.mxu0 %v515_v0 }
  0x3c   :  { %409 = vmatpush3.bf16.msra.mxu1 %v452_v9 }
  0x3d   :  { %410 = vmatprep.subr.bf16.mxu1 %v515_v0  ;;  %425 = vmatpush3.bf16.msra.mxu0 %v458_v15 }
  0x3e   :  { %426 = vmatprep.subr.bf16.mxu0 %v515_v0 }
  0x40   :  { %411 = vmatpush3.bf16.msra.mxu1 %v453_v10 }
  0x41   :  { %412 = vmatprep.subr.bf16.mxu1 %v515_v0  ;;  %427 = vmatpush3.bf16.msra.mxu0 %v459_v16 }
  0x42   :  { %428 = vmatprep.subr.bf16.mxu0 %v515_v0 }
  0x44   :  { %413 = vmatpush3.bf16.msra.mxu1 %v454_v11 }
  0x45   :  { %429 = vmatpush3.bf16.msra.mxu0 %v460_v17 }
  0x46   :  { %430 = vmatprep.subr.bf16.mxu0 %v515_v0 }
  0x49   :  { %431 = vmatpush3.bf16.msra.mxu0 %v461_v33 }
  0x4a   :  { %432 = vmatprep.subr.bf16.mxu0 %v515_v0 }
  0x4d   :  { %433 = vmatpush3.bf16.msra.mxu0 %v462_v34 }
 0x102   :  { %v139_v24 = vpop.f32.mrb[0].mxu0 }
 0x103   :  { %v140_v25 = vadd.f32 %v139_v24, %v83_v23  ;;  %v396_v26 = vpop.f32.mrb[1].mxu0 }
 0x104   :  { %v142_v27 = vpop.f32.mrb[2].mxu0 }
 0x105   :  { %v143_v28 = vadd.f32 %v142_v27, %v83_v23  ;;  %v397_v29 = vpop.f32.mrb[3].mxu0  ;;  %v146_v30 = vmax.f32 %v140_v25, 0.0 }
 0x107   :  { %v147_v31 = vmax.f32 %v143_v28, 0.0 }
 0x109   :  { %v148_v32 = vpack.c.bf16 %v147_v31, %v146_v30 }
 0x10b   :  { %415 = vmatmul.mubr.bf16.vlgmr.msra.gmra.mrb[0].mxu1 %v148_v32 }
 0x1de   :  { %v235_v37 = vpop.f32.mrb[0].mxu1 }
 0x1df   :  { %v236_v38 = vadd.f32 %v235_v37, %v152_v36  ;;  %v416_v39 = vpop.f32.mrb[1].mxu1 }
 0x1e0   :  { %v238_v40 = vpop.f32.mrb[2].mxu1 }
 0x1e1   :  { %v239_v41 = vadd.f32 %v238_v40, %v152_v36  ;;  %v417_v42 = vpop.f32.mrb[3].mxu1  ;;  %v242_v43 = vmax.f32 %v236_v38, 0.0 }
 0x1e3   :  { %v243_v44 = vmax.f32 %v239_v41, 0.0 }
 0x1e5   :  { %v244_v45 = vpack.c.bf16 %v243_v44, %v242_v43 }
 0x1e7   :  { %435 = vmatmul.mubr.bf16.vlgmr.msra.gmra.mrb[4].mxu0 %v244_v45 }
 0x2ba   :  { %v327_v48 = vpop.f32.mrb[4].mxu0 }
 0x2bb   :  { %v338_v49 = vadd.f32 %v337_v47, %v327_v48  ;;  %v436_v50 = vpop.f32.mrb[5].mxu0 }
 0x2bc   :  { %v330_v51 = vpop.f32.mrb[6].mxu0 }
 0x2bd   :  { %341 = vst.msk [vmem:[%s588_s2] sm:$0xff] %vm340_vm2, %v338_v49  ;;  %v339_v52 = vadd.f32 %v337_v47, %v330_v51  ;;  %v437_v53 = vpop.f32.mrb[7].mxu0 }
 0x2bf   :  { %342 = vst.msk [vmem:[%s588_s2 + $0x8] sm:$0xff] %vm340_vm2, %v339_v52 }
 0x2c0   :  { %347 = vsyncpa [#allocation3], 1 }
 0x2c1   :  { %348 = vsyncpa [#allocation5], 1 }

</bundles_post_ra>
